<compile_context>
chip_gen: v6e
topology: v6e:2x2x1
jax: 0.10.0
libtpu: 0.0.40
codegen_flags: <defaults>
</compile_context>

<pallas_src>
import jax
import jax.numpy as jnp
from jax import lax
from jax.experimental import pallas as pl
from jax.experimental.pallas import tpu as pltpu


def _round_up(x, m):
    return (x + m - 1) // m * m


def _pick_n_tile(dim_out):
    dim_out_p = _round_up(dim_out, 128)
    for cand in (512, 256, 128):
        if dim_out_p % cand == 0:
            return cand
    return 128


def _geglu_kernel(x_ref, w_ref, b_ref, o_ref):
    tn = o_ref.shape[-1]
    # One fused MXU matmul, native-dtype operands, f32 accumulation.
    y = jnp.dot(x_ref[...], w_ref[...], preferred_element_type=jnp.float32)
    y = y + b_ref[...]                      # bias pre-stored as f32
    h = y[:, :tn]                           # "hidden" half of this N tile
    g = y[:, tn:]                           # "gate" half of this N tile
    # Exact (erf) GELU, matching torch.nn.functional.gelu default.
    gelu_g = 0.5 * g * (1.0 + lax.erf(g * 0.7071067811865476))
    o_ref[...] = (h * gelu_g).astype(o_ref.dtype)


def prepare_geglu_params(weight, bias, *, n_tile=None):
    """One-time parameter prep (call at init, not per forward).

    weight: (2*dim_out, dim_in)  -- torch nn.Linear layout
    bias:   (2*dim_out,)
    Returns (w_fused, b_fused, dim_out, n_tile) where w_fused is
    (dim_in, 2*dim_out_p) with N-tile-interleaved layout
    [Wh_tile0 | Wg_tile0 | Wh_tile1 | Wg_tile1 | ...] so every kernel step sees
    its hidden and gate columns contiguously (single fused matmul).
    """
    two_dim_out, dim_in = weight.shape
    dim_out = two_dim_out // 2
    if n_tile is None:
        n_tile = _pick_n_tile(dim_out)
    dim_out_p = _round_up(dim_out, n_tile)
    n_tiles = dim_out_p // n_tile
    pad_n = dim_out_p - dim_out

    wh = jnp.pad(weight[:dim_out, :].T, ((0, 0), (0, pad_n)))
    wg = jnp.pad(weight[dim_out:, :].T, ((0, 0), (0, pad_n)))
    w_fused = jnp.concatenate(
        [wh.reshape(dim_in, n_tiles, n_tile), wg.reshape(dim_in, n_tiles, n_tile)],
        axis=2,
    ).reshape(dim_in, 2 * dim_out_p).astype(weight.dtype)

    bh = jnp.pad(bias[:dim_out], (0, pad_n)).astype(jnp.float32)
    bg = jnp.pad(bias[dim_out:], (0, pad_n)).astype(jnp.float32)
    b_fused = jnp.concatenate(
        [bh.reshape(n_tiles, n_tile), bg.reshape(n_tiles, n_tile)], axis=1
    ).reshape(1, 2 * dim_out_p)

    return w_fused, b_fused, dim_out, n_tile


def geglu_pallas_prepared(x, w_fused, b_fused, dim_out, n_tile, *, row_tile=256):
    """GEGLU forward with pre-prepared (fused/interleaved/padded) params."""
    *lead, dim_in = x.shape
    dim_out_p = w_fused.shape[1] // 2
    n_tiles_n = dim_out_p // n_tile

    M = 1
    for d in lead:
        M *= d
    x2 = x.reshape(M, dim_in)

    # Row tile: multiple of the sublane pack (8 f32 / 16 bf16), capped.
    sub = 16 if x.dtype == jnp.bfloat16 else 8
    row_tile = max(sub, min(row_tile, _round_up(M, sub)))
    row_tile = _round_up(row_tile, sub)
    M_p = _round_up(M, row_tile)
    if M_p != M:
        x2 = jnp.pad(x2, ((0, M_p - M), (0, 0)))
    n_tiles_m = M_p // row_tile

    # N outer (weight tile stays resident across the inner M sweep), M inner.
    grid = (n_tiles_n, n_tiles_m)

    out = pl.pallas_call(
        _geglu_kernel,
        out_shape=jax.ShapeDtypeStruct((M_p, dim_out_p), x.dtype),
        grid_spec=pltpu.PrefetchScalarGridSpec(
            num_scalar_prefetch=0,
            grid=grid,
            in_specs=[
                pl.BlockSpec((row_tile, dim_in), lambda j, i: (i, 0)),     # x rows
                pl.BlockSpec((dim_in, 2 * n_tile), lambda j, i: (0, j)),   # [Wh|Wg] tile
                pl.BlockSpec((1, 2 * n_tile), lambda j, i: (0, j)),        # [bh|bg] tile
            ],
            out_specs=pl.BlockSpec((row_tile, n_tile), lambda j, i: (i, j)),
        ),
        compiler_params=pltpu.CompilerParams(
            dimension_semantics=("parallel", "parallel"),
            vmem_limit_bytes=64 * 1024 * 1024,
        ),
    )(x2, w_fused, b_fused)

    out = out[:M, :dim_out]
    return out.reshape(*lead, dim_out)


def geglu_pallas(x, weight, bias, *, row_tile=256):
    """Convenience wrapper (does param prep per call — hoist prep for perf)."""
    w_fused, b_fused, dim_out, n_tile = prepare_geglu_params(weight, bias)
    return geglu_pallas_prepared(x, w_fused, b_fused, dim_out, n_tile,
                                 row_tile=row_tile)


def geglu_reference(x, weight, bias):
    proj = jnp.einsum("...k,nk->...n", x, weight) + bias
    dim_out = weight.shape[0] // 2
    h, g = proj[..., :dim_out], proj[..., dim_out:]
    return h * jax.nn.gelu(g.astype(jnp.float32), approximate=False).astype(g.dtype)


if __name__ == "__main__":
    # Module hyperparams (synthetic, deterministic init — no checkpoint).
    dim_in, dim_out = 32, 32
    batch, seq = 2, 8

    key = jax.random.PRNGKey(0)
    kx, kw, kb = jax.random.split(key, 3)

    # PyTorch nn.Linear default init: U(-1/sqrt(dim_in), 1/sqrt(dim_in))
    bound = 1.0 / (dim_in ** 0.5)
    weight = jax.random.uniform(kw, (2 * dim_out, dim_in), jnp.float32, -bound, bound)
    bias = jax.random.uniform(kb, (2 * dim_out,), jnp.float32, -bound, bound)

    x = jax.random.normal(kx, (batch, seq, dim_in), jnp.float32)

    # Hoist the weight prep (transpose/interleave/pad) out of the call path.
    w_fused, b_fused, d_out, n_tile = prepare_geglu_params(weight, bias)
    w_fused = jax.block_until_ready(w_fused)

    out = geglu_pallas_prepared(x, w_fused, b_fused, d_out, n_tile)
    out = jax.block_until_ready(out)

    ref = geglu_reference(x, weight, bias)
    assert out.shape == (batch, seq, dim_out), out.shape
    assert jnp.allclose(out, ref, atol=1e-5, rtol=1e-5), float(jnp.max(jnp.abs(out - ref)))

    print("KERNEL_OK")
</pallas_src>

<mosaic_0001>
module attributes {stable_mosaic.version = 11 : i64} {
  func.func @_geglu_kernel(%arg0: i32, %arg1: i32, %arg2: memref<16x32xf32, #tpu.memory_space<vmem>>, %arg3: memref<32x256xf32, #tpu.memory_space<vmem>>, %arg4: memref<1x256xf32, #tpu.memory_space<vmem>>, %arg5: memref<16x128xf32, #tpu.memory_space<vmem>>) attributes {dimension_semantics = [#tpu.dimension_semantics<parallel>, #tpu.dimension_semantics<parallel>], iteration_bounds = array<i64: 1, 1>, scalar_prefetch = 0 : i64, scratch_operands = 0 : i64, tpu.core_type = #tpu.core_type<tc>, window_params = [{transform_indices = @transform_0, window_bounds = array<i64: 16, 32>}, {transform_indices = @transform_1, window_bounds = array<i64: 32, 256>}, {transform_indices = @transform_2, window_bounds = array<i64: 1, 256>}, {transform_indices = @transform_3, window_bounds = array<i64: 16, 128>}]} {
    %c0 = arith.constant 0 : index
    %c0_0 = arith.constant 0 : index
    %0 = vector.load %arg2[%c0, %c0_0] : memref<16x32xf32, #tpu.memory_space<vmem>>, vector<16x32xf32>
    %c0_1 = arith.constant 0 : index
    %c0_2 = arith.constant 0 : index
    %1 = vector.load %arg3[%c0_1, %c0_2] : memref<32x256xf32, #tpu.memory_space<vmem>>, vector<32x256xf32>
    %cst = arith.constant dense<0.000000e+00> : vector<16x256xf32>
    %2 = tpu.matmul %0, %1, %cst {dimension_numbers = #tpu.dot_dimension_numbers<[1], [0], [0], [1], [0, 0, 1, 1], [], []>} : vector<16x32xf32>, vector<32x256xf32>, vector<16x256xf32> -> vector<16x256xf32>
    %c0_3 = arith.constant 0 : index
    %c0_4 = arith.constant 0 : index
    %3 = vector.load %arg4[%c0_3, %c0_4] : memref<1x256xf32, #tpu.memory_space<vmem>>, vector<1x256xf32>
    %4 = vector.broadcast %3 : vector<1x256xf32> to vector<16x256xf32>
    %5 = arith.addf %2, %4 : vector<16x256xf32>
    %6 = vector.extract_strided_slice %5 {offsets = [0, 0], sizes = [16, 128], strides = [1, 1]} : vector<16x256xf32> to vector<16x128xf32>
    %7 = vector.extract_strided_slice %5 {offsets = [0, 128], sizes = [16, 128], strides = [1, 1]} : vector<16x256xf32> to vector<16x128xf32>
    %cst_5 = arith.constant 5.000000e-01 : f32
    %8 = vector.broadcast %cst_5 : f32 to vector<16x128xf32>
    %9 = arith.mulf %8, %7 : vector<16x128xf32>
    %cst_6 = arith.constant 0.707106769 : f32
    %10 = vector.broadcast %cst_6 : f32 to vector<16x128xf32>
    %11 = arith.mulf %7, %10 : vector<16x128xf32>
    %12 = math.erf %11 : vector<16x128xf32>
    %cst_7 = arith.constant 1.000000e+00 : f32
    %13 = vector.broadcast %cst_7 : f32 to vector<16x128xf32>
    %14 = arith.addf %13, %12 : vector<16x128xf32>
    %15 = arith.mulf %9, %14 : vector<16x128xf32>
    %16 = arith.mulf %6, %15 : vector<16x128xf32>
    %c0_8 = arith.constant 0 : index
    %c0_9 = arith.constant 0 : index
    %17 = vector.load %arg5[%c0_8, %c0_9] : memref<16x128xf32, #tpu.memory_space<vmem>>, vector<16x128xf32>
    tpu.vector_store %arg5[%c0_8, %c0_9], %16 {strides = array<i32>} : memref<16x128xf32, #tpu.memory_space<vmem>>, vector<16x128xf32>,
    return
  }
  func.func @transform_0(%arg0: i32, %arg1: i32) -> (i32, i32) {
    %c0_i32 = arith.constant 0 : i32
    %c0_i32_0 = arith.constant 0 : i32
    return %arg1, %c0_i32 : i32, i32
  }
  func.func @transform_1(%arg0: i32, %arg1: i32) -> (i32, i32) {
    %c0_i32 = arith.constant 0 : i32
    %c0_i32_0 = arith.constant 0 : i32
    return %c0_i32, %arg0 : i32, i32
  }
  func.func @transform_2(%arg0: i32, %arg1: i32) -> (i32, i32) {
    %c0_i32 = arith.constant 0 : i32
    %c0_i32_0 = arith.constant 0 : i32
    return %c0_i32, %arg0 : i32, i32
  }
  func.func @transform_3(%arg0: i32, %arg1: i32) -> (i32, i32) {
    %c0_i32 = arith.constant 0 : i32
    return %arg1, %arg0 : i32, i32
  }
}

</mosaic_0001>

<bundles_post_ra>
// kernel: tpu_custom_call.1
= control target key start
LH: loop header
LB: loop body
LE: loop exit
PB: predicated region body
PF: predicated region fallthrough
CT: control target
= control target key end

     0   :  { %8 = vsyncpa [#allocation3], 0  ;;  %s315_s0 = inlined_call_operand.hbm [shape: f32[16,32], index: 0, kind: input, shape index: {}]   ;;  %s316_s1 = inlined_call_operand.hbm [shape: f32[32,256], index: 1, kind: input, shape index: {}]   ;;  %s317_s2 = inlined_call_operand.vmem [shape: f32[1,256], index: 2, kind: input, shape index: {}]   ;;  %s318_s3 = inlined_call_operand.hbm [shape: f32[16,128], index: 3, kind: output, shape index: {}]  }
   0x1   :  { %9 = vsyncpa [#allocation6], 0 }
   0x2   :  { %10 = vsyncpa [#allocation4], 0  ;;  %s269_s12 = smov [#allocation2]  }
   0x3   :  { %s16_s13 = sshll.u32 %s269_s12, 4  ;;  %s17_s13 = int_to_ptr.vmem [resolvable:$true] %s16_s13 }
   0x4   :  { %s211_s14 = scalar_lea.vmem %s17_s13, 256  ;;  %p216_p1 = scmp.lt.s32.totalorder %s17_s13, %s17_s13 }
   0x5   :  { %p212_p0 = scmp.ne.s32.totalorder %s17_s13, %s211_s14  ;;  %p217_p2 = scmp.lt.s32.totalorder %s211_s14, %s211_s14 }
   0x7   :  { %p218_p3 = por %p217_p2, %p216_p1 }
   0x9   :  { %p219_p4 = pnand %p218_p3, %p212_p0 }
   0xb   :  { %222 = shalt.err (!%p219_p4)
}
   0xc   :  { %s270_s15 = smov 128   ;;  %s271_s16 = smov 8  }
   0xd   :  { %22 = dma.hbm_to_vmem [thread:$0]  %s315_s0, 256, %s17_s13, [#allocation3], %s270_s15, %s270_s15, %s271_s16  }
   0xe   :  { %s272_s19 = smov [#allocation5]  }
   0xf   :  { %s28_s20 = sshll.u32 %s272_s19, 4  ;;  %s29_s20 = int_to_ptr.vmem [resolvable:$true] %s28_s20 }
  0x10   :  { %s231_s21 = scalar_lea.vmem %s29_s20, 1024  ;;  %p236_p6 = scmp.lt.s32.totalorder %s29_s20, %s29_s20 }
  0x11   :  { %p232_p5 = scmp.ne.s32.totalorder %s29_s20, %s231_s21  ;;  %p237_p7 = scmp.lt.s32.totalorder %s231_s21, %s231_s21 }
  0x13   :  { %p238_p8 = por %p237_p7, %p236_p6 }
  0x15   :  { %p239_p9 = pnand %p238_p8, %p232_p5 }
  0x17   :  { %242 = shalt.err (!%p239_p9)
}
  0x18   :  { %s273_s22 = smov 256   ;;  %s274_s23 = smov 16  }
  0x19   :  { %34 = dma.hbm_to_vmem [thread:$0]  %s316_s1, 1024, %s29_s20, [#allocation6], %s273_s22, %s273_s22, %s274_s23  }
  0x1a   :  { %263 = dma.done.wait [#allocation3], 256  }
  0x1b   :  { %264 = vsyncadd [#allocation3], 4294967040 }
  0x1c   :  { %265 = dma.done.wait [#allocation6], 1024  }
  0x1d   :  { %266 = vsyncadd [#allocation6], 4294966272  ;;  %v275_v0 = vmov 0.0   ;;  %v52_v1 = vld [vmem:[#allocation5 + $0x38] sm:$0xff]  ;;  %v51_v2 = vld [vmem:[#allocation5 + $0x30] sm:$0xff]  ;;  %vm65_vm0 = vcmask 261120   ;;  %v55_v11 = vlaneseq }
  0x1e   :  { %136 = vmatprep.mubr.f32.mxu0 %v275_v0  ;;  %142 = vmatprep.mubr.f32.mxu1 %v275_v0  ;;  %v50_v3 = vld [vmem:[#allocation5 + $0x28] sm:$0xff]  ;;  %v49_v4 = vld [vmem:[#allocation5 + $0x20] sm:$0xff]  ;;  %v48_v5 = vld [vmem:[#allocation5 + $0x18] sm:$0xff] }
  0x1f   :  { %96 = vmatprep.subr.mxu0 %v52_v1  ;;  %183 = vmatprep.subr.mxu1 %v52_v1  ;;  %v47_v6 = vld [vmem:[#allocation5 + $0x10] sm:$0xff]  ;;  %v46_v7 = vld [vmem:[#allocation5 + $0x8] sm:$0xff]  ;;  %v45_v8 = vld [vmem:[#allocation5] sm:$0xff]  ;;  %v56_v12 = vshrl.u32 %v55_v11, 7 }
  0x20   :  { %97 = vmatpush1.msra.mxu0 %v51_v2  ;;  %187 = vmatpush1.msra.mxu1 %v51_v2  ;;  %v43_v9 = vld [vmem:[#allocation2] sm:$0xff]  ;;  %v44_v10 = vld [vmem:[#allocation2 + $0x8] sm:$0xff] }
  0x21   :  { %98 = vmatprep.subr.mxu0 %v50_v3  ;;  %184 = vmatprep.subr.mxu1 %v50_v3  ;;  %v61_v13 = vsub.s32 1, %v56_v12  ;;  %v53_v14 = vld [vmem:[%s317_s2] sm:$0x3]  ;;  %v57_v24 = vsub.s32 0, %v56_v12  ;;  %s276_s2 = smov [#allocation7]  }
  0x22   :  { %99 = vmatpush1.msra.mxu0 %v49_v4  ;;  %188 = vmatpush1.msra.mxu1 %v49_v4  ;;  %s168_s26 = sshll.u32 %s276_s2, 4  ;;  %s169_s26 = int_to_ptr.vmem [resolvable:$true] %s168_s26 }
  0x23   :  { %100 = vmatprep.subr.mxu0 %v48_v5  ;;  %185 = vmatprep.subr.mxu1 %v48_v5  ;;  %v62_v15 = vrot.slane %v53_v14, %v61_v13  ;;  %v58_v25 = vrot.slane %v53_v14, %v57_v24  ;;  %s243_s27 = scalar_lea.vmem %s169_s26, 256  ;;  %p248_p11 = scmp.lt.s32.totalorder %s169_s26, %s169_s26 }
  0x24   :  { %101 = vmatpush1.msra.mxu0 %v47_v6  ;;  %189 = vmatpush1.msra.mxu1 %v47_v6  ;;  %p244_p10 = scmp.ne.s32.totalorder %s169_s26, %s243_s27  ;;  %p249_p12 = scmp.lt.s32.totalorder %s243_s27, %s243_s27 }
  0x25   :  { %102 = vmatprep.subr.mxu0 %v46_v7  ;;  %186 = vmatprep.subr.mxu1 %v46_v7 }
  0x26   :  { %103 = vmatpush1.msra.mxu0 %v45_v8  ;;  %190 = vmatpush1.msra.mxu1 %v45_v8  ;;  %p250_p13 = por %p249_p12, %p248_p11 }
  0x27   :  { %181 = vmatmul.mubr.msk.f32.vlgmr.msra.gmra.mxu0 %vm65_vm0, %v43_v9  ;;  %182 = vmatmul.mubr.msk.f32.vlgmr.msra.gmra.mxu1 %vm65_vm0, %v44_v10 }
  0x28   :  { %p251_p0 = pnand %p250_p13, %p244_p10 }
  0xe7   :  { %v138_v16 = vpop.f32.mrf.mxu0  ;;  %v144_v17 = vpop.f32.mrf.mxu1 }
  0xe8   :  { %v139_v32 = vadd.f32 %v138_v16, %v58_v25  ;;  %v145_v34 = vadd.f32 %v144_v17, %v58_v25 }
  0xe9   :  { %v140_v18 = vpop.f32.mrf.mxu0  ;;  %v146_v19 = vpop.f32.mrf.mxu1 }
  0xea   :  { %v141_v20 = vadd.f32 %v140_v18, %v62_v15  ;;  %v147_v21 = vadd.f32 %v146_v19, %v62_v15 }
  0xec   :  { %v151_v22 = vmul.f32 0.70710677, %v141_v20  ;;  %v152_v23 = vmul.f32 0.70710677, %v147_v21  ;;  %v149_v28 = vmul.f32 0.5, %v141_v20  ;;  %v150_v30 = vmul.f32 0.5, %v147_v21 }
  0xee   :  { %199 = verf.f32 %v151_v22 }
  0xef   :  { %201 = verf.f32 %v152_v23 }
  0xfb   :  { %v200_v26 = vpop.eup %199 }
  0xfc   :  { %v202_v27 = vpop.eup %201  ;;  %v155_v29 = vadd.f32 1.0, %v200_v26 }
  0xfd   :  { %v156_v31 = vadd.f32 1.0, %v202_v27 }
  0xfe   :  { %v157_v33 = vmul.f32 %v155_v29, %v149_v28 }
  0xff   :  { %v158_v35 = vmul.f32 %v156_v31, %v150_v30 }
 0x100   :  { %v159_v36 = vmul.f32 %v157_v33, %v139_v32 }
 0x101   :  { %v160_v37 = vmul.f32 %v158_v35, %v145_v34 }
 0x102   :  { %161 = vst [vmem:[#allocation7] sm:$0xff] %v159_v36 }
 0x103   :  { %162 = vst [vmem:[#allocation7 + $0x8] sm:$0xff] %v160_v37 }
 0x104   :  { %254 = shalt.err (!%p251_p0)
}
 0x105   :  { %174 = dma.vmem_to_hbm [thread:$0]  %s169_s26, 256, %s318_s3, [#allocation4], %s270_s15, %s270_s15, %s271_s16  }
 0x106   :  { %267 = dma.done.wait [#allocation4], 256  }
 0x107   :  { %268 = vsyncadd [#allocation4], 4294967040 }
 0x108   :  { %178 = vsyncpa [#allocation3], 1 }
 0x109   :  { %179 = vsyncpa [#allocation6], 1 }
 0x10a   :  { %180 = vsyncpa [#allocation4], 1 }

</bundles_post_ra>
